<compile_context>
chip_gen: v7x
topology: tpu7x:2x2x1
jax: 0.10.0
libtpu: 0.0.40
codegen_flags: <defaults>
</compile_context>

<pallas_src>
import jax
import jax.numpy as jnp
from jax.experimental import pallas as pl
from jax.experimental.pallas import tpu as pltpu


def _round_up(x, m):
    return ((x + m - 1) // m) * m


def _tpu_generation():
    """Best-effort TPU generation probe: 'v5e' | 'v6e' | 'v7x' | None."""
    try:
        kind = jax.devices()[0].device_kind.lower()
    except Exception:
        return None
    if "7" in kind:
        return "v7x"
    if "v6" in kind:
        return "v6e"
    if "v5" in kind:
        return "v5e"
    return None


def mlp_kernel(x_ref, w1_ref, b1_ref, w2_ref, b2_ref, o_ref):
    # First linear (MXU, f32 accumulation) + bias + ReLU (VPU, f32).
    h = jnp.dot(x_ref[...], w1_ref[...], preferred_element_type=jnp.float32)
    h = jnp.maximum(h + b1_ref[...], 0.0)          # b1 is (1, H), broadcast over rows
    # Second linear; cast h to the weight dtype (bf16 on v6e/v7x) to pack the MXU.
    # b2 already has the scalar `bias` folded in host-side; epilogue stays f32.
    y = jnp.dot(h.astype(w2_ref.dtype), w2_ref[...],
                preferred_element_type=jnp.float32)
    o_ref[...] = (y + b2_ref[...]).astype(o_ref.dtype)


def _make_specs(block_n, D_in, H, D_out, single_buffer_weights):
    wkw = dict(pipeline_mode=pl.Buffered(1)) if single_buffer_weights else {}
    in_specs = [
        # x tiled over the batch dimension
        pl.BlockSpec((block_n, D_in), lambda i: (i, 0)),
        # weights / biases: full arrays, same block every grid step (invariant)
        pl.BlockSpec((D_in, H), lambda i: (0, 0), **wkw),
        pl.BlockSpec((1, H), lambda i: (0, 0), **wkw),
        pl.BlockSpec((H, D_out), lambda i: (0, 0), **wkw),
        pl.BlockSpec((1, D_out), lambda i: (0, 0), **wkw),
    ]
    out_specs = pl.BlockSpec((block_n, D_out), lambda i: (i, 0))
    return in_specs, out_specs


def extended_model_forward(x, w1t, b1, w2t, b2, bias=0.0, *,
                           block_n=None, use_bf16=None):
    """x: (N, D_in); w1t: (D_in, H); b1: (H,); w2t: (H, D_out); b2: (D_out,)."""
    N, D_in = x.shape
    H = w1t.shape[1]
    D_out = w2t.shape[1]
    out_dtype = x.dtype

    gen = _tpu_generation()
    n_cores = 2 if gen == "v7x" else 1          # megacore: 2 TCs on v7x
    if use_bf16 is None:
        use_bf16 = gen in ("v6e", "v7x")        # bf16-native MXUs

    if block_n is None:
        cap = 2048                              # review: 2048-4096 rows; keep mult of 8
        target = pl.cdiv(N, n_cores)            # >=2 grid steps on v7x so both TCs work
        block_n = min(cap, _round_up(max(target, 8), 8))

    grid_n = pl.cdiv(N, block_n)
    padded_N = grid_n * block_n
    if padded_N != N:
        x = jnp.pad(x, ((0, padded_N - N), (0, 0)))   # ragged tail -> pad, slice later

    mm_dtype = jnp.bfloat16 if use_bf16 else jnp.float32
    x_mm = x.astype(mm_dtype)
    w1_mm = w1t.astype(mm_dtype)
    w2_mm = w2t.astype(mm_dtype)
    # Biases + folded scalar bias stay f32 (epilogue math is f32 on every gen).
    b1_2d = b1.reshape(1, H).astype(jnp.float32)
    b2_2d = (b2.reshape(1, D_out) + jnp.float32(bias)).astype(jnp.float32)

    itemsize = jnp.dtype(mm_dtype).itemsize
    cost = pl.CostEstimate(
        flops=2 * padded_N * (D_in * H + H * D_out),
        bytes_accessed=(itemsize * (padded_N * D_in + D_in * H + H * D_out)
                        + 4 * (H + D_out + padded_N * D_out)),
        transcendentals=0,
    )

    def run(single_buffer_weights):
        in_specs, out_specs = _make_specs(block_n, D_in, H, D_out,
                                          single_buffer_weights)
        y = pl.pallas_call(
            mlp_kernel,
            out_shape=jax.ShapeDtypeStruct((padded_N, D_out), out_dtype),
            grid_spec=pltpu.PrefetchScalarGridSpec(
                num_scalar_prefetch=0,
                grid=(grid_n,),
                in_specs=in_specs,
                out_specs=out_specs,
            ),
            compiler_params=pltpu.CompilerParams(
                dimension_semantics=("parallel",),
                vmem_limit_bytes=32 * 1024 * 1024,   # fits v5e/v6e/v7x budgets
            ),
            cost_estimate=cost,
        )(x_mm, w1_mm, b1_2d, w2_mm, b2_2d)
        return jax.block_until_ready(y)

    try:
        y = run(single_buffer_weights=True)
    except Exception:
        # Fallback if this jax build rejects pl.Buffered(1) on invariant operands.
        y = run(single_buffer_weights=False)

    return y[:N] if padded_N != N else y


def init_params(key, D_in, H, D_out):
    """Deterministic init mirroring nn.Linear's uniform(-1/sqrt(fan_in), 1/sqrt(fan_in))."""
    k1, k2, k3, k4 = jax.random.split(key, 4)
    lim1 = 1.0 / (D_in ** 0.5)
    lim2 = 1.0 / (H ** 0.5)
    # Stored pre-transposed: (D_in, H) and (H, D_out)
    w1t = jax.random.uniform(k1, (D_in, H), jnp.float32, -lim1, lim1)
    b1 = jax.random.uniform(k2, (H,), jnp.float32, -lim1, lim1)
    w2t = jax.random.uniform(k3, (H, D_out), jnp.float32, -lim2, lim2)
    b2 = jax.random.uniform(k4, (D_out,), jnp.float32, -lim2, lim2)
    return w1t, b1, w2t, b2


if __name__ == "__main__":
    key = jax.random.PRNGKey(0)
    N, D_in, H, D_out = 16, 32, 64, 16
    bias = 0.5

    kx, kp = jax.random.split(key)
    x = jax.random.normal(kx, (N, D_in), jnp.float32)
    w1t, b1, w2t, b2 = init_params(kp, D_in, H, D_out)

    use_bf16 = _tpu_generation() in ("v6e", "v7x")
    y = extended_model_forward(x, w1t, b1, w2t, b2, bias=bias, use_bf16=use_bf16)
    y = jax.block_until_ready(y)

    # Pure-JAX f32 reference check (tolerance relaxed when bf16 operands are used).
    h_ref = jnp.maximum(x @ w1t + b1, 0.0)
    y_ref = h_ref @ w2t + b2 + bias
    assert y.shape == (N, D_out)
    tol = 5e-2 if use_bf16 else 1e-5
    assert jnp.allclose(y, y_ref, atol=tol, rtol=tol)

    print("KERNEL_OK")
</pallas_src>

<mosaic_0001>
module attributes {stable_mosaic.version = 11 : i64} {
  func.func @mlp_kernel(%arg0: i32, %arg1: memref<16x32xf32, #tpu.memory_space<vmem>>, %arg2: memref<32x64xf32, #tpu.memory_space<vmem>>, %arg3: memref<1x64xf32, #tpu.memory_space<vmem>>, %arg4: memref<64x16xf32, #tpu.memory_space<vmem>>, %arg5: memref<1x16xf32, #tpu.memory_space<vmem>>, %arg6: memref<16x16xf32, #tpu.memory_space<vmem>>) attributes {dimension_semantics = [#tpu.dimension_semantics<parallel>], iteration_bounds = array<i64: 1>, scalar_prefetch = 0 : i64, scratch_operands = 0 : i64, tpu.core_type = #tpu.core_type<tc>, window_params = [{transform_indices = @transform_0, window_bounds = array<i64: 16, 32>}, {pipeline_mode = #tpu.pipeline_mode<synchronous>, transform_indices = @transform_1, window_bounds = array<i64: 32, 64>}, {pipeline_mode = #tpu.pipeline_mode<synchronous>, transform_indices = @transform_2, window_bounds = array<i64: 1, 64>}, {pipeline_mode = #tpu.pipeline_mode<synchronous>, transform_indices = @transform_3, window_bounds = array<i64: 64, 16>}, {pipeline_mode = #tpu.pipeline_mode<synchronous>, transform_indices = @transform_4, window_bounds = array<i64: 1, 16>}, {transform_indices = @transform_5, window_bounds = array<i64: 16, 16>}]} {
    %c0 = arith.constant 0 : index
    %c0_0 = arith.constant 0 : index
    %0 = vector.load %arg1[%c0, %c0_0] : memref<16x32xf32, #tpu.memory_space<vmem>>, vector<16x32xf32>
    %c0_1 = arith.constant 0 : index
    %c0_2 = arith.constant 0 : index
    %1 = vector.load %arg2[%c0_1, %c0_2] : memref<32x64xf32, #tpu.memory_space<vmem>>, vector<32x64xf32>
    %cst = arith.constant dense<0.000000e+00> : vector<16x64xf32>
    %2 = tpu.matmul %0, %1, %cst {dimension_numbers = #tpu.dot_dimension_numbers<[1], [0], [0], [1], [0, 0, 1, 1], [], []>} : vector<16x32xf32>, vector<32x64xf32>, vector<16x64xf32> -> vector<16x64xf32>
    %c0_3 = arith.constant 0 : index
    %c0_4 = arith.constant 0 : index
    %3 = vector.load %arg3[%c0_3, %c0_4] : memref<1x64xf32, #tpu.memory_space<vmem>>, vector<1x64xf32>
    %4 = vector.broadcast %3 : vector<1x64xf32> to vector<16x64xf32>
    %5 = arith.addf %2, %4 : vector<16x64xf32>
    %cst_5 = arith.constant 0.000000e+00 : f32
    %6 = vector.broadcast %cst_5 : f32 to vector<16x64xf32>
    %7 = arith.maximumf %5, %6 : vector<16x64xf32>
    %c0_6 = arith.constant 0 : index
    %c0_7 = arith.constant 0 : index
    %8 = vector.load %arg4[%c0_6, %c0_7] : memref<64x16xf32, #tpu.memory_space<vmem>>, vector<64x16xf32>
    %cst_8 = arith.constant dense<0.000000e+00> : vector<16x16xf32>
    %9 = tpu.matmul %7, %8, %cst_8 {dimension_numbers = #tpu.dot_dimension_numbers<[1], [0], [0], [1], [0, 0, 1, 1], [], []>} : vector<16x64xf32>, vector<64x16xf32>, vector<16x16xf32> -> vector<16x16xf32>
    %c0_9 = arith.constant 0 : index
    %c0_10 = arith.constant 0 : index
    %10 = vector.load %arg5[%c0_9, %c0_10] : memref<1x16xf32, #tpu.memory_space<vmem>>, vector<1x16xf32>
    %11 = vector.broadcast %10 : vector<1x16xf32> to vector<16x16xf32>
    %12 = arith.addf %9, %11 : vector<16x16xf32>
    %c0_11 = arith.constant 0 : index
    %c0_12 = arith.constant 0 : index
    %13 = vector.load %arg6[%c0_11, %c0_12] : memref<16x16xf32, #tpu.memory_space<vmem>>, vector<16x16xf32>
    tpu.vector_store %arg6[%c0_11, %c0_12], %12 {strides = array<i32>} : memref<16x16xf32, #tpu.memory_space<vmem>>, vector<16x16xf32>,
    return
  }
  func.func @transform_0(%arg0: i32) -> (i32, i32) {
    %c0_i32 = arith.constant 0 : i32
    %c0_i32_0 = arith.constant 0 : i32
    return %arg0, %c0_i32 : i32, i32
  }
  func.func @transform_1(%arg0: i32) -> (i32, i32) {
    %c0_i32 = arith.constant 0 : i32
    %c0_i32_0 = arith.constant 0 : i32
    %c0_i32_1 = arith.constant 0 : i32
    return %c0_i32, %c0_i32_0 : i32, i32
  }
  func.func @transform_2(%arg0: i32) -> (i32, i32) {
    %c0_i32 = arith.constant 0 : i32
    %c0_i32_0 = arith.constant 0 : i32
    %c0_i32_1 = arith.constant 0 : i32
    return %c0_i32, %c0_i32_0 : i32, i32
  }
  func.func @transform_3(%arg0: i32) -> (i32, i32) {
    %c0_i32 = arith.constant 0 : i32
    %c0_i32_0 = arith.constant 0 : i32
    %c0_i32_1 = arith.constant 0 : i32
    return %c0_i32, %c0_i32_0 : i32, i32
  }
  func.func @transform_4(%arg0: i32) -> (i32, i32) {
    %c0_i32 = arith.constant 0 : i32
    %c0_i32_0 = arith.constant 0 : i32
    %c0_i32_1 = arith.constant 0 : i32
    return %c0_i32, %c0_i32_0 : i32, i32
  }
  func.func @transform_5(%arg0: i32) -> (i32, i32) {
    %c0_i32 = arith.constant 0 : i32
    %c0_i32_0 = arith.constant 0 : i32
    return %arg0, %c0_i32 : i32, i32
  }
}

module attributes {stable_mosaic.version = 11 : i64} {
  func.func @mlp_kernel(%arg0: i32, %arg1: memref<16x32xf32, #tpu.memory_space<vmem>>, %arg2: memref<32x64xf32, #tpu.memory_space<vmem>>, %arg3: memref<1x64xf32, #tpu.memory_space<vmem>>, %arg4: memref<64x16xf32, #tpu.memory_space<vmem>>, %arg5: memref<1x16xf32, #tpu.memory_space<vmem>>, %arg6: memref<16x16xf32, #tpu.memory_space<vmem>>) attributes {dimension_semantics = [#tpu.dimension_semantics<parallel>], iteration_bounds = array<i64: 1>, scalar_prefetch = 0 : i64, scratch_operands = 0 : i64, tpu.core_type = #tpu.core_type<tc>, window_params = [{transform_indices = @transform_0, window_bounds = array<i64: 16, 32>}, {pipeline_mode = #tpu.pipeline_mode<synchronous>, transform_indices = @transform_1, window_bounds = array<i64: 32, 64>}, {pipeline_mode = #tpu.pipeline_mode<synchronous>, transform_indices = @transform_2, window_bounds = array<i64: 1, 64>}, {pipeline_mode = #tpu.pipeline_mode<synchronous>, transform_indices = @transform_3, window_bounds = array<i64: 64, 16>}, {pipeline_mode = #tpu.pipeline_mode<synchronous>, transform_indices = @transform_4, window_bounds = array<i64: 1, 16>}, {transform_indices = @transform_5, window_bounds = array<i64: 16, 16>}]} {
    %c0 = arith.constant 0 : index
    %c0_0 = arith.constant 0 : index
    %0 = vector.load %arg1[%c0, %c0_0] : memref<16x32xf32, #tpu.memory_space<vmem>>, vector<16x32xf32>
    %c0_1 = arith.constant 0 : index
    %c0_2 = arith.constant 0 : index
    %1 = vector.load %arg2[%c0_1, %c0_2] : memref<32x64xf32, #tpu.memory_space<vmem>>, vector<32x64xf32>
    %cst = arith.constant dense<0.000000e+00> : vector<16x64xf32>
    %2 = tpu.matmul %0, %1, %cst {dimension_numbers = #tpu.dot_dimension_numbers<[1], [0], [0], [1], [0, 0, 1, 1], [], []>} : vector<16x32xf32>, vector<32x64xf32>, vector<16x64xf32> -> vector<16x64xf32>
    %c0_3 = arith.constant 0 : index
    %c0_4 = arith.constant 0 : index
    %3 = vector.load %arg3[%c0_3, %c0_4] : memref<1x64xf32, #tpu.memory_space<vmem>>, vector<1x64xf32>
    %4 = vector.broadcast %3 : vector<1x64xf32> to vector<16x64xf32>
    %5 = arith.addf %2, %4 : vector<16x64xf32>
    %cst_5 = arith.constant 0.000000e+00 : f32
    %6 = vector.broadcast %cst_5 : f32 to vector<16x64xf32>
    %7 = arith.maximumf %5, %6 : vector<16x64xf32>
    %c0_6 = arith.constant 0 : index
    %c0_7 = arith.constant 0 : index
    %8 = vector.load %arg4[%c0_6, %c0_7] : memref<64x16xf32, #tpu.memory_space<vmem>>, vector<64x16xf32>
    %cst_8 = arith.constant dense<0.000000e+00> : vector<16x16xf32>
    %9 = tpu.matmul %7, %8, %cst_8 {dimension_numbers = #tpu.dot_dimension_numbers<[1], [0], [0], [1], [0, 0, 1, 1], [], []>} : vector<16x64xf32>, vector<64x16xf32>, vector<16x16xf32> -> vector<16x16xf32>
    %c0_9 = arith.constant 0 : index
    %c0_10 = arith.constant 0 : index
    %10 = vector.load %arg5[%c0_9, %c0_10] : memref<1x16xf32, #tpu.memory_space<vmem>>, vector<1x16xf32>
    %11 = vector.broadcast %10 : vector<1x16xf32> to vector<16x16xf32>
    %12 = arith.addf %9, %11 : vector<16x16xf32>
    %c0_11 = arith.constant 0 : index
    %c0_12 = arith.constant 0 : index
    %13 = vector.load %arg6[%c0_11, %c0_12] : memref<16x16xf32, #tpu.memory_space<vmem>>, vector<16x16xf32>
    tpu.vector_store %arg6[%c0_11, %c0_12], %12 {strides = array<i32>} : memref<16x16xf32, #tpu.memory_space<vmem>>, vector<16x16xf32>,
    return
  }
  func.func @transform_0(%arg0: i32) -> (i32, i32) {
    %c0_i32 = arith.constant 0 : i32
    %c0_i32_0 = arith.constant 0 : i32
    return %arg0, %c0_i32 : i32, i32
  }
  func.func @transform_1(%arg0: i32) -> (i32, i32) {
    %c0_i32 = arith.constant 0 : i32
    %c0_i32_0 = arith.constant 0 : i32
    %c0_i32_1 = arith.constant 0 : i32
    return %c0_i32, %c0_i32_0 : i32, i32
  }
  func.func @transform_2(%arg0: i32) -> (i32, i32) {
    %c0_i32 = arith.constant 0 : i32
    %c0_i32_0 = arith.constant 0 : i32
    %c0_i32_1 = arith.constant 0 : i32
    return %c0_i32, %c0_i32_0 : i32, i32
  }
  func.func @transform_3(%arg0: i32) -> (i32, i32) {
    %c0_i32 = arith.constant 0 : i32
    %c0_i32_0 = arith.constant 0 : i32
    %c0_i32_1 = arith.constant 0 : i32
    return %c0_i32, %c0_i32_0 : i32, i32
  }
  func.func @transform_4(%arg0: i32) -> (i32, i32) {
    %c0_i32 = arith.constant 0 : i32
    %c0_i32_0 = arith.constant 0 : i32
    %c0_i32_1 = arith.constant 0 : i32
    return %c0_i32, %c0_i32_0 : i32, i32
  }
  func.func @transform_5(%arg0: i32) -> (i32, i32) {
    %c0_i32 = arith.constant 0 : i32
    %c0_i32_0 = arith.constant 0 : i32
    return %arg0, %c0_i32 : i32, i32
  }
}

</mosaic_0001>

<bundles_post_ra>
// kernel: tpu_custom_call.1
= control target key start
LH: loop header
LB: loop body
LE: loop exit
PB: predicated region body
PF: predicated region fallthrough
CT: control target
= control target key end

     0   :  { %vm34_vm0 = vcmask 261120   ;;  %s432_s0 = inlined_call_operand.vmem [shape: f32[16,32], index: 0, kind: input, shape index: {}]   ;;  %s433_s1 = inlined_call_operand.vmem [shape: f32[32,64], index: 1, kind: input, shape index: {}]   ;;  %s434_s2 = inlined_call_operand.vmem [shape: f32[1,64], index: 2, kind: input, shape index: {}]   ;;  %s435_s3 = inlined_call_operand.vmem [shape: f32[64,16], index: 3, kind: input, shape index: {}]   ;;  %s436_s4 = inlined_call_operand.vmem [shape: f32[1,16], index: 4, kind: input, shape index: {}]   ;;  %s437_s5 = inlined_call_operand.hbm [shape: f32[16,16], index: 5, kind: output, shape index: {}]  }
   0x1   :  { %v23_v0 = vld [vmem:[%s433_s1] sm:$0xff]  ;;  %v24_v1 = vld [vmem:[%s433_s1 + $0x8] sm:$0xff]  ;;  %v25_v2 = vld [vmem:[%s433_s1 + $0x10] sm:$0xff] }
   0x2   :  { %v286_v3 = vpack.c.bf16 %v24_v1, %v23_v0  ;;  %v26_v4 = vld [vmem:[%s433_s1 + $0x18] sm:$0xff]  ;;  %v21_v5 = vld [vmem:[%s432_s0] sm:$0xff]  ;;  %v119_v8 = vld [vmem:[%s435_s3 + $0x8] sm:$0xff] }
   0x3   :  { %v290_v6 = vpack.c.bf16 %v26_v4, %v25_v2  ;;  %264 = vmatprep.mubr.msk.f32.mxu0 %vm34_vm0, %v21_v5  ;;  %v118_v7 = vld [vmem:[%s435_s3] sm:$0xff]  ;;  %v120_v9 = vld [vmem:[%s435_s3 + $0x10] sm:$0xff]  ;;  %v121_v11 = vld [vmem:[%s435_s3 + $0x18] sm:$0xff] }
   0x4   :  { %287 = vmatprep.subr.bf16.mxu0 %v286_v3  ;;  %v294_v10 = vpack.c.bf16 %v119_v8, %v118_v7  ;;  %v298_v12 = vpack.c.bf16 %v121_v11, %v120_v9  ;;  %v122_v13 = vld [vmem:[%s435_s3 + $0x20] sm:$0xff]  ;;  %v123_v14 = vld [vmem:[%s435_s3 + $0x28] sm:$0xff] }
   0x5   :  { %289 = vmatpush3.bf16.msra.mxu0 %v286_v3 }
   0x6   :  { %10 = vsyncpa [#allocation3], 0  ;;  %291 = vmatprep.subr.bf16.mxu0 %v290_v6  ;;  %295 = vmatprep.subr.bf16.mxu1 %v294_v10  ;;  %v302_v15 = vpack.c.bf16 %v123_v14, %v122_v13  ;;  %v22_v16 = vld [vmem:[%s432_s0 + $0x8] sm:$0xff]  ;;  %v124_v17 = vld [vmem:[%s435_s3 + $0x30] sm:$0xff]  ;;  %vm133_vm1 = vcmask 523264   ;;  %vm215_vm2 = vcmask 130048  }
   0x7   :  { %297 = vmatpush3.bf16.msra.mxu1 %v294_v10  ;;  %v125_v18 = vld [vmem:[%s435_s3 + $0x38] sm:$0xff]  ;;  %v234_v20 = vld [vmem:[%s434_s2] ss:$0 sm:$0xff]  ;;  %s337_s3 = smov [#allocation2]  }
   0x8   :  { %299 = vmatprep.subr.bf16.mxu1 %v298_v12  ;;  %v306_v19 = vpack.c.bf16 %v125_v18, %v124_v17  ;;  %v237_v27 = vld [vmem:[%s436_s4] ss:$0 sm:$0xff]  ;;  %s223_s23 = sshll.u32 %s337_s3, 4  ;;  %s224_s23 = int_to_ptr.vmem [resolvable:$true] %s223_s23 }
   0x9   :  { %293 = vmatpush3.bf16.msra.mxu0 %v290_v6  ;;  %s313_s2 = scalar_lea.vmem %s224_s23, 256  ;;  %p318_p1 = scmp.lt.s32.totalorder %s224_s23, %s224_s23 }
   0xa   :  { %p314_p0 = scmp.ne.s32.totalorder %s224_s23, %s313_s2  ;;  %p319_p2 = scmp.lt.s32.totalorder %s313_s2, %s313_s2 }
   0xb   :  { %301 = vmatpush3.bf16.msra.mxu1 %v298_v12 }
   0xc   :  { %265 = vmatmul.mubr.msk.f32.vlgmr.msra.gmra.mrb[0].mxu0 %vm34_vm0, %v22_v16  ;;  %303 = vmatprep.subr.bf16.mxu1 %v302_v15  ;;  %p320_p3 = por %p319_p2, %p318_p1 }
   0xe   :  { %p321_p4 = pnand %p320_p3, %p314_p0 }
   0xf   :  { %305 = vmatpush3.bf16.msra.mxu1 %v302_v15 }
  0x10   :  { %307 = vmatprep.subr.bf16.mxu1 %v306_v19 }
  0x13   :  { %309 = vmatpush3.bf16.msra.mxu1 %v306_v19 }
  0xdf   :  { %v266_v21 = vpop.f32.mrb[0].mxu0 }
  0xe0   :  { %v113_v22 = vadd.f32 %v266_v21, %v234_v20  ;;  %v107_v23 = vpop.f32.mrb[1].mxu0 }
  0xe1   :  { %v108_v24 = vadd.f32 %v234_v20, %v107_v23 }
  0xe2   :  { %v117_v26 = vmax.f32 %v113_v22, 0.0 }
  0xe3   :  { %v116_v25 = vmax.f32 %v108_v24, 0.0 }
  0xe5   :  { %283 = vmatprep.mubr.msk.f32.mxu1 %vm133_vm1, %v116_v25 }
  0xe6   :  { %284 = vmatmul.mubr.msk.f32.vlgmr.msra.gmra.mrb[0].mxu1 %vm133_vm1, %v117_v26 }
 0x1b9   :  { %v285_v28 = vpop.f32.mrb[0].mxu1 }
 0x1ba   :  { %v212_v29 = vadd.f32 %v285_v28, %v237_v27  ;;  %v206_v30 = vpop.f32.mrb[1].mxu1 }
 0x1bb   :  { %v207_v31 = vadd.f32 %v237_v27, %v206_v30 }
 0x1bc   :  { %217 = vst.msk [vmem:[#allocation2 + $0x8] sm:$0xff] %vm215_vm2, %v212_v29 }
 0x1bd   :  { %216 = vst.msk [vmem:[#allocation2] sm:$0xff] %vm215_vm2, %v207_v31 }
 0x1be   :  { %324 = shalt.err (!%p321_p4)
}
 0x1bf   :  { %s325_s4 = scalar_lea.hbm %s437_s5, 256 }
 0x1c0   :  { %p326_p5 = scmp.ne.s32.totalorder %s437_s5, %s325_s4  ;;  %p329_p6 = scmp.lt.u32.totalorder %s325_s4, %s437_s5 }
 0x1c2   :  { %p331_p7 = pnand %p329_p6, %p326_p5 }
 0x1c4   :  { %334 = shalt.err (!%p331_p7)
}
 0x1c5   :  { %s338_s30 = smov 128   ;;  %s339_s6 = smov 8  }
 0x1c6   :  { %229 = dma.vmem_to_hbm [thread:$0]  %s224_s23, 256, %s437_s5, [#allocation3], %s338_s30, %s338_s30, %s339_s6  }
 0x1c7   :  { %335 = dma.done.wait [#allocation3], 256  }
 0x1c8   :  { %336 = vsyncadd [#allocation3], 4294967040 }
 0x1c9   :  { %233 = vsyncpa [#allocation3], 1 }

// kernel: tpu_custom_call.1
= control target key start
LH: loop header
LB: loop body
LE: loop exit
PB: predicated region body
PF: predicated region fallthrough
CT: control target
= control target key end

     0   :  { %vm34_vm0 = vcmask 261120   ;;  %s432_s0 = inlined_call_operand.vmem [shape: f32[16,32], index: 0, kind: input, shape index: {}]   ;;  %s433_s1 = inlined_call_operand.vmem [shape: f32[32,64], index: 1, kind: input, shape index: {}]   ;;  %s434_s2 = inlined_call_operand.vmem [shape: f32[1,64], index: 2, kind: input, shape index: {}]   ;;  %s435_s3 = inlined_call_operand.vmem [shape: f32[64,16], index: 3, kind: input, shape index: {}]   ;;  %s436_s4 = inlined_call_operand.vmem [shape: f32[1,16], index: 4, kind: input, shape index: {}]   ;;  %s437_s5 = inlined_call_operand.hbm [shape: f32[16,16], index: 5, kind: output, shape index: {}]  }
   0x1   :  { %v23_v0 = vld [vmem:[%s433_s1] sm:$0xff]  ;;  %v24_v1 = vld [vmem:[%s433_s1 + $0x8] sm:$0xff]  ;;  %v25_v2 = vld [vmem:[%s433_s1 + $0x10] sm:$0xff] }
   0x2   :  { %v286_v3 = vpack.c.bf16 %v24_v1, %v23_v0  ;;  %v26_v4 = vld [vmem:[%s433_s1 + $0x18] sm:$0xff]  ;;  %v21_v5 = vld [vmem:[%s432_s0] sm:$0xff]  ;;  %v119_v8 = vld [vmem:[%s435_s3 + $0x8] sm:$0xff] }
   0x3   :  { %v290_v6 = vpack.c.bf16 %v26_v4, %v25_v2  ;;  %264 = vmatprep.mubr.msk.f32.mxu0 %vm34_vm0, %v21_v5  ;;  %v118_v7 = vld [vmem:[%s435_s3] sm:$0xff]  ;;  %v120_v9 = vld [vmem:[%s435_s3 + $0x10] sm:$0xff]  ;;  %v121_v11 = vld [vmem:[%s435_s3 + $0x18] sm:$0xff] }
   0x4   :  { %287 = vmatprep.subr.bf16.mxu0 %v286_v3  ;;  %v294_v10 = vpack.c.bf16 %v119_v8, %v118_v7  ;;  %v298_v12 = vpack.c.bf16 %v121_v11, %v120_v9  ;;  %v122_v13 = vld [vmem:[%s435_s3 + $0x20] sm:$0xff]  ;;  %v123_v14 = vld [vmem:[%s435_s3 + $0x28] sm:$0xff] }
   0x5   :  { %289 = vmatpush3.bf16.msra.mxu0 %v286_v3 }
   0x6   :  { %10 = vsyncpa [#allocation3], 0  ;;  %291 = vmatprep.subr.bf16.mxu0 %v290_v6  ;;  %295 = vmatprep.subr.bf16.mxu1 %v294_v10  ;;  %v302_v15 = vpack.c.bf16 %v123_v14, %v122_v13  ;;  %v22_v16 = vld [vmem:[%s432_s0 + $0x8] sm:$0xff]  ;;  %v124_v17 = vld [vmem:[%s435_s3 + $0x30] sm:$0xff]  ;;  %vm133_vm1 = vcmask 523264   ;;  %vm215_vm2 = vcmask 130048  }
   0x7   :  { %297 = vmatpush3.bf16.msra.mxu1 %v294_v10  ;;  %v125_v18 = vld [vmem:[%s435_s3 + $0x38] sm:$0xff]  ;;  %v234_v20 = vld [vmem:[%s434_s2] ss:$0 sm:$0xff]  ;;  %s337_s3 = smov [#allocation2]  }
   0x8   :  { %299 = vmatprep.subr.bf16.mxu1 %v298_v12  ;;  %v306_v19 = vpack.c.bf16 %v125_v18, %v124_v17  ;;  %v237_v27 = vld [vmem:[%s436_s4] ss:$0 sm:$0xff]  ;;  %s223_s23 = sshll.u32 %s337_s3, 4  ;;  %s224_s23 = int_to_ptr.vmem [resolvable:$true] %s223_s23 }
   0x9   :  { %293 = vmatpush3.bf16.msra.mxu0 %v290_v6  ;;  %s313_s2 = scalar_lea.vmem %s224_s23, 256  ;;  %p318_p1 = scmp.lt.s32.totalorder %s224_s23, %s224_s23 }
   0xa   :  { %p314_p0 = scmp.ne.s32.totalorder %s224_s23, %s313_s2  ;;  %p319_p2 = scmp.lt.s32.totalorder %s313_s2, %s313_s2 }
   0xb   :  { %301 = vmatpush3.bf16.msra.mxu1 %v298_v12 }
   0xc   :  { %265 = vmatmul.mubr.msk.f32.vlgmr.msra.gmra.mrb[0].mxu0 %vm34_vm0, %v22_v16  ;;  %303 = vmatprep.subr.bf16.mxu1 %v302_v15  ;;  %p320_p3 = por %p319_p2, %p318_p1 }
   0xe   :  { %p321_p4 = pnand %p320_p3, %p314_p0 }
   0xf   :  { %305 = vmatpush3.bf16.msra.mxu1 %v302_v15 }
  0x10   :  { %307 = vmatprep.subr.bf16.mxu1 %v306_v19 }
  0x13   :  { %309 = vmatpush3.bf16.msra.mxu1 %v306_v19 }
  0xdf   :  { %v266_v21 = vpop.f32.mrb[0].mxu0 }
  0xe0   :  { %v113_v22 = vadd.f32 %v266_v21, %v234_v20  ;;  %v107_v23 = vpop.f32.mrb[1].mxu0 }
  0xe1   :  { %v108_v24 = vadd.f32 %v234_v20, %v107_v23 }
  0xe2   :  { %v117_v26 = vmax.f32 %v113_v22, 0.0 }
  0xe3   :  { %v116_v25 = vmax.f32 %v108_v24, 0.0 }
  0xe5   :  { %283 = vmatprep.mubr.msk.f32.mxu1 %vm133_vm1, %v116_v25 }
  0xe6   :  { %284 = vmatmul.mubr.msk.f32.vlgmr.msra.gmra.mrb[0].mxu1 %vm133_vm1, %v117_v26 }
 0x1b9   :  { %v285_v28 = vpop.f32.mrb[0].mxu1 }
 0x1ba   :  { %v212_v29 = vadd.f32 %v285_v28, %v237_v27  ;;  %v206_v30 = vpop.f32.mrb[1].mxu1 }
 0x1bb   :  { %v207_v31 = vadd.f32 %v237_v27, %v206_v30 }
 0x1bc   :  { %217 = vst.msk [vmem:[#allocation2 + $0x8] sm:$0xff] %vm215_vm2, %v212_v29 }
 0x1bd   :  { %216 = vst.msk [vmem:[#allocation2] sm:$0xff] %vm215_vm2, %v207_v31 }
 0x1be   :  { %324 = shalt.err (!%p321_p4)
}
 0x1bf   :  { %s325_s4 = scalar_lea.hbm %s437_s5, 256 }
 0x1c0   :  { %p326_p5 = scmp.ne.s32.totalorder %s437_s5, %s325_s4  ;;  %p329_p6 = scmp.lt.u32.totalorder %s325_s4, %s437_s5 }
 0x1c2   :  { %p331_p7 = pnand %p329_p6, %p326_p5 }
 0x1c4   :  { %334 = shalt.err (!%p331_p7)
}
 0x1c5   :  { %s338_s30 = smov 128   ;;  %s339_s6 = smov 8  }
 0x1c6   :  { %229 = dma.vmem_to_hbm [thread:$0]  %s224_s23, 256, %s437_s5, [#allocation3], %s338_s30, %s338_s30, %s339_s6  }
 0x1c7   :  { %335 = dma.done.wait [#allocation3], 256  }
 0x1c8   :  { %336 = vsyncadd [#allocation3], 4294967040 }
 0x1c9   :  { %233 = vsyncpa [#allocation3], 1 }

</bundles_post_ra>
